<compile_context>
chip_gen: v5e
topology: v5e:2x2
jax: 0.10.0
libtpu: 0.0.40
codegen_flags: <defaults>
</compile_context>

<pallas_src>
import jax
import jax.numpy as jnp
from jax.experimental import pallas as pl
from jax.experimental.pallas import tpu as pltpu


def _round_up(x, m):
    return ((x + m - 1) // m) * m


# ---------------------------------------------------------------------------
# Kernel: whole forward hot path, weights VMEM-resident, 3 MXU dots per tile.
# ---------------------------------------------------------------------------
def _foster_kernel(x_ref, w1_ref, b1_ref, w2_ref, b2_ref, wh_ref, bh_ref,
                   feat_ref, head_ref):
    bf16 = jnp.bfloat16

    # bf16 MXU operands, f32 accumulation. Bias add / ReLU / stores stay f32.
    xb = x_ref[...].astype(bf16)                                   # (TB, in_dim)

    h = jnp.dot(xb, w1_ref[...], preferred_element_type=jnp.float32) + b1_ref[...]
    h = jnp.maximum(h, 0.0)                                        # (TB, 2*hidden)

    f = jnp.dot(h.astype(bf16), w2_ref[...],
                preferred_element_type=jnp.float32) + b2_ref[...]
    f = jnp.maximum(f, 0.0)                                        # (TB, 2*out_dim) = [f1|f2]
    feat_ref[...] = f                                              # one unmasked 128-lane store

    head_ref[...] = (
        jnp.dot(f.astype(bf16), wh_ref[...], preferred_element_type=jnp.float32)
        + bh_ref[...]
    )                                                              # logits|fe|old|pad, lane-dense


# ---------------------------------------------------------------------------
# One-time weight packing (hoisted out of the per-call path).
# ---------------------------------------------------------------------------
def pack_params(params):
    f32, bf16 = jnp.float32, jnp.bfloat16
    hidden = params["w1a"].shape[1]
    out_dim = params["w2a"].shape[1]
    C = params["fcw"].shape[1]
    Co = params["oldw"].shape[1]
    head_pad = _round_up(2 * C + Co, 128)

    # Layer 1: column-fused  x @ [w1a | w1b]
    w1 = jnp.concatenate([params["w1a"], params["w1b"]], axis=1).astype(bf16)
    b1 = jnp.concatenate([params["b1a"], params["b1b"]], axis=1).astype(f32)

    # Layer 2: block-diagonal so one dot yields the concatenated feature slab [f1 | f2]
    w2 = jnp.zeros((2 * hidden, 2 * out_dim), f32)
    w2 = w2.at[:hidden, :out_dim].set(params["w2a"])
    w2 = w2.at[hidden:, out_dim:].set(params["w2b"])
    w2 = w2.astype(bf16)
    b2 = jnp.concatenate([params["b2a"], params["b2b"]], axis=1).astype(f32)

    # Fused, lane-padded head:  [ fc | fe_fc(f2) | oldfc(f1) | 0-pad ]
    wh = jnp.zeros((2 * out_dim, head_pad), f32)
    wh = wh.at[:, :C].set(params["fcw"])                       # fc over [f1|f2]
    wh = wh.at[out_dim:, C:2 * C].set(params["few"])           # fe_fc over f2
    wh = wh.at[:out_dim, 2 * C:2 * C + Co].set(params["oldw"])  # oldfc over f1
    wh = wh.astype(bf16)

    bh = jnp.zeros((1, head_pad), f32)
    bh = bh.at[:, :C].set(params["fcb"])
    bh = bh.at[:, C:2 * C].set(params["feb"])
    bh = bh.at[:, 2 * C:2 * C + Co].set(params["oldb"])

    meta = dict(hidden=hidden, out_dim=out_dim, nb_classes=C, nb_old=Co,
                head_pad=head_pad)
    return (w1, b1, w2, b2, wh, bh), meta


def _pick_tile(B):
    rows = _round_up(max(B, 1), 8)
    if rows <= 128:
        return rows                                   # tiny batch: one tile
    if rows <= 2048:
        return _round_up((rows + 1) // 2, 8)          # >=2 tiles for v7x megacore
    return 1024                                       # large batch: 1024-row tiles


# ---------------------------------------------------------------------------
# Wrapper: BlockSpecs / grid + slicing the fused head back into named logits.
# ---------------------------------------------------------------------------
def foster_forward(x, packed, meta):
    B, in_dim = x.shape
    hidden = meta["hidden"]
    out_dim = meta["out_dim"]
    C, Co = meta["nb_classes"], meta["nb_old"]
    FEAT = 2 * out_dim
    HEAD_PAD = meta["head_pad"]

    TB = _pick_tile(B)
    B_pad = _round_up(B, TB)
    # Only a row pad when needed; no feature-dim re-materialization of x.
    x_in = x if B_pad == B else jnp.pad(x, ((0, B_pad - B), (0, 0)))

    weights = packed  # (w1, b1, w2, b2, wh, bh)

    def resident(a):
        # Whole array, VMEM-resident across all batch tiles.
        return pl.BlockSpec(a.shape, lambda i: (0, 0))

    grid = (B_pad // TB,)
    in_specs = [pl.BlockSpec((TB, in_dim), lambda i: (i, 0))]
    in_specs += [resident(a) for a in weights]
    out_specs = (
        pl.BlockSpec((TB, FEAT), lambda i: (i, 0)),
        pl.BlockSpec((TB, HEAD_PAD), lambda i: (i, 0)),
    )

    flops = 2 * B_pad * (in_dim * 2 * hidden + 2 * hidden * FEAT + FEAT * HEAD_PAD)
    bytes_accessed = int(
        x_in.size * x_in.dtype.itemsize
        + sum(int(a.size) * a.dtype.itemsize for a in weights)
        + B_pad * (FEAT + HEAD_PAD) * 4
    )

    feats_pad, head_pad_out = pl.pallas_call(
        _foster_kernel,
        grid=grid,
        out_shape=(
            jax.ShapeDtypeStruct((B_pad, FEAT), jnp.float32),
            jax.ShapeDtypeStruct((B_pad, HEAD_PAD), jnp.float32),
        ),
        in_specs=in_specs,
        out_specs=out_specs,
        compiler_params=pltpu.CompilerParams(
            dimension_semantics=("parallel",),
            vmem_limit_bytes=32 * 1024 * 1024,
        ),
        cost_estimate=pl.CostEstimate(
            flops=flops, transcendentals=0, bytes_accessed=bytes_accessed
        ),
    )(x_in, *weights)

    feats = feats_pad[:B]
    logits = head_pad_out[:B, :C]
    fe_logits = head_pad_out[:B, C:2 * C]
    old_logits = head_pad_out[:B, 2 * C:2 * C + Co]

    return {
        "logits": logits,
        "fe_logits": fe_logits,
        "old_logits": old_logits,
        "features": feats,
        "eval_logits": logits,
    }


# ---------------------------------------------------------------------------
# Deterministic synthetic parameters (PyTorch stores (out,in); kept (in,out) here).
# ---------------------------------------------------------------------------
def make_params(key, input_dim, hidden, out_dim, nb_classes, nb_old):
    keys = jax.random.split(key, 8)
    scale = 0.05

    def lin(k, fan_in, fan_out):
        kw, kb = jax.random.split(k)
        w = scale * jax.random.normal(kw, (fan_in, fan_out), jnp.float32)
        b = scale * jax.random.normal(kb, (1, fan_out), jnp.float32)
        return w, b

    w1a, b1a = lin(keys[0], input_dim, hidden)
    w2a, b2a = lin(keys[1], hidden, out_dim)
    w1b, b1b = lin(keys[2], input_dim, hidden)
    w2b, b2b = lin(keys[3], hidden, out_dim)
    fcw, fcb = lin(keys[4], 2 * out_dim, nb_classes)
    few, feb = lin(keys[5], out_dim, nb_classes)
    oldw, oldb = lin(keys[6], out_dim, nb_old)

    return dict(
        w1a=w1a, b1a=b1a, w2a=w2a, b2a=b2a,
        w1b=w1b, b1b=b1b, w2b=w2b, b2b=b2b,
        fcw=fcw, fcb=fcb, few=few, feb=feb, oldw=oldw, oldb=oldb,
    )


def reference_forward(x, p):
    """Pure-JAX f32 reference of the same forward."""
    def mlp(w1, b1, w2, b2):
        h = jnp.maximum(x @ w1 + b1, 0.0)
        return jnp.maximum(h @ w2 + b2, 0.0)

    f1 = mlp(p["w1a"], p["b1a"], p["w2a"], p["b2a"])
    f2 = mlp(p["w1b"], p["b1b"], p["w2b"], p["b2b"])
    feats = jnp.concatenate([f1, f2], axis=1)
    logits = feats @ p["fcw"] + p["fcb"]
    fe_logits = f2 @ p["few"] + p["feb"]
    old_logits = f1 @ p["oldw"] + p["oldb"]
    return {
        "logits": logits,
        "fe_logits": fe_logits,
        "old_logits": old_logits,
        "features": feats,
        "eval_logits": logits,
    }


if __name__ == "__main__":
    key = jax.random.PRNGKey(0)
    kx, kp = jax.random.split(key)

    B = 8            # batch
    INPUT_DIM = 121  # kdd_ann input dim
    HIDDEN = 128
    OUT_DIM = 64     # per-backbone feature dim
    NB_CLASSES = 10  # current total classes
    NB_OLD = 6       # classes before the latest increment

    x = jax.random.normal(kx, (B, INPUT_DIM), jnp.float32)
    params = make_params(kp, INPUT_DIM, HIDDEN, OUT_DIM, NB_CLASSES, NB_OLD)

    packed, meta = pack_params(params)           # hoisted weight packing (once)
    fwd = jax.jit(lambda xx: foster_forward(xx, packed, meta))

    out = fwd(x)
    jax.block_until_ready(out)

    # bf16 MXU operands (f32 accumulate) vs f32 reference -> loosened tolerance.
    ref = reference_forward(x, params)
    for k in ("logits", "fe_logits", "old_logits", "features", "eval_logits"):
        assert out[k].shape == ref[k].shape, (k, out[k].shape, ref[k].shape)
        assert jnp.allclose(out[k], ref[k], atol=2e-2, rtol=2e-2), k

    print("KERNEL_OK")
</pallas_src>

<mosaic_0001>
module attributes {stable_mosaic.version = 11 : i64} {
  func.func @_foster_kernel(%arg0: i32, %arg1: memref<8x121xf32, #tpu.memory_space<vmem>>, %arg2: memref<121x256xbf16, #tpu.memory_space<vmem>>, %arg3: memref<1x256xf32, #tpu.memory_space<vmem>>, %arg4: memref<256x128xbf16, #tpu.memory_space<vmem>>, %arg5: memref<1x128xf32, #tpu.memory_space<vmem>>, %arg6: memref<128x128xbf16, #tpu.memory_space<vmem>>, %arg7: memref<1x128xf32, #tpu.memory_space<vmem>>, %arg8: memref<8x128xf32, #tpu.memory_space<vmem>>, %arg9: memref<8x128xf32, #tpu.memory_space<vmem>>) attributes {dimension_semantics = [#tpu.dimension_semantics<parallel>], iteration_bounds = array<i64: 1>, scalar_prefetch = 0 : i64, scratch_operands = 0 : i64, tpu.core_type = #tpu.core_type<tc>, window_params = [{transform_indices = @transform_0, window_bounds = array<i64: 8, 121>}, {pipeline_mode = #tpu.pipeline_mode<synchronous>, transform_indices = @transform_1, window_bounds = array<i64: 121, 256>}, {pipeline_mode = #tpu.pipeline_mode<synchronous>, transform_indices = @transform_2, window_bounds = array<i64: 1, 256>}, {pipeline_mode = #tpu.pipeline_mode<synchronous>, transform_indices = @transform_3, window_bounds = array<i64: 256, 128>}, {pipeline_mode = #tpu.pipeline_mode<synchronous>, transform_indices = @transform_4, window_bounds = array<i64: 1, 128>}, {pipeline_mode = #tpu.pipeline_mode<synchronous>, transform_indices = @transform_5, window_bounds = array<i64: 128, 128>}, {pipeline_mode = #tpu.pipeline_mode<synchronous>, transform_indices = @transform_6, window_bounds = array<i64: 1, 128>}, {transform_indices = @transform_7, window_bounds = array<i64: 8, 128>}, {transform_indices = @transform_8, window_bounds = array<i64: 8, 128>}]} {
    %c0 = arith.constant 0 : index
    %c0_0 = arith.constant 0 : index
    %0 = vector.load %arg1[%c0, %c0_0] : memref<8x121xf32, #tpu.memory_space<vmem>>, vector<8x121xf32>
    %1 = arith.truncf %0 : vector<8x121xf32> to vector<8x121xbf16>
    %c0_1 = arith.constant 0 : index
    %c0_2 = arith.constant 0 : index
    %2 = vector.load %arg2[%c0_1, %c0_2] : memref<121x256xbf16, #tpu.memory_space<vmem>>, vector<121x256xbf16>
    %cst = arith.constant dense<0.000000e+00> : vector<8x256xf32>
    %3 = tpu.matmul %1, %2, %cst {dimension_numbers = #tpu.dot_dimension_numbers<[1], [0], [0], [1], [0, 0, 1, 1], [], []>} : vector<8x121xbf16>, vector<121x256xbf16>, vector<8x256xf32> -> vector<8x256xf32>
    %c0_3 = arith.constant 0 : index
    %c0_4 = arith.constant 0 : index
    %4 = vector.load %arg3[%c0_3, %c0_4] : memref<1x256xf32, #tpu.memory_space<vmem>>, vector<1x256xf32>
    %5 = vector.broadcast %4 : vector<1x256xf32> to vector<8x256xf32>
    %6 = arith.addf %3, %5 : vector<8x256xf32>
    %cst_5 = arith.constant 0.000000e+00 : f32
    %7 = vector.broadcast %cst_5 : f32 to vector<8x256xf32>
    %8 = arith.maximumf %6, %7 : vector<8x256xf32>
    %9 = arith.truncf %8 : vector<8x256xf32> to vector<8x256xbf16>
    %c0_6 = arith.constant 0 : index
    %c0_7 = arith.constant 0 : index
    %10 = vector.load %arg4[%c0_6, %c0_7] : memref<256x128xbf16, #tpu.memory_space<vmem>>, vector<256x128xbf16>
    %cst_8 = arith.constant dense<0.000000e+00> : vector<8x128xf32>
    %11 = tpu.matmul %9, %10, %cst_8 {dimension_numbers = #tpu.dot_dimension_numbers<[1], [0], [0], [1], [0, 0, 1, 1], [], []>} : vector<8x256xbf16>, vector<256x128xbf16>, vector<8x128xf32> -> vector<8x128xf32>
    %c0_9 = arith.constant 0 : index
    %c0_10 = arith.constant 0 : index
    %12 = vector.load %arg5[%c0_9, %c0_10] : memref<1x128xf32, #tpu.memory_space<vmem>>, vector<1x128xf32>
    %13 = vector.broadcast %12 : vector<1x128xf32> to vector<8x128xf32>
    %14 = arith.addf %11, %13 : vector<8x128xf32>
    %cst_11 = arith.constant 0.000000e+00 : f32
    %15 = vector.broadcast %cst_11 : f32 to vector<8x128xf32>
    %16 = arith.maximumf %14, %15 : vector<8x128xf32>
    %c0_12 = arith.constant 0 : index
    %c0_13 = arith.constant 0 : index
    %17 = vector.load %arg8[%c0_12, %c0_13] : memref<8x128xf32, #tpu.memory_space<vmem>>, vector<8x128xf32>
    tpu.vector_store %arg8[%c0_12, %c0_13], %16 {strides = array<i32>} : memref<8x128xf32, #tpu.memory_space<vmem>>, vector<8x128xf32>,
    %18 = arith.truncf %16 : vector<8x128xf32> to vector<8x128xbf16>
    %c0_14 = arith.constant 0 : index
    %c0_15 = arith.constant 0 : index
    %19 = vector.load %arg6[%c0_14, %c0_15] : memref<128x128xbf16, #tpu.memory_space<vmem>>, vector<128x128xbf16>
    %cst_16 = arith.constant dense<0.000000e+00> : vector<8x128xf32>
    %20 = tpu.matmul %18, %19, %cst_16 {dimension_numbers = #tpu.dot_dimension_numbers<[1], [0], [0], [1], [0, 0, 1, 1], [], []>} : vector<8x128xbf16>, vector<128x128xbf16>, vector<8x128xf32> -> vector<8x128xf32>
    %c0_17 = arith.constant 0 : index
    %c0_18 = arith.constant 0 : index
    %21 = vector.load %arg7[%c0_17, %c0_18] : memref<1x128xf32, #tpu.memory_space<vmem>>, vector<1x128xf32>
    %22 = vector.broadcast %21 : vector<1x128xf32> to vector<8x128xf32>
    %23 = arith.addf %20, %22 : vector<8x128xf32>
    %c0_19 = arith.constant 0 : index
    %c0_20 = arith.constant 0 : index
    %24 = vector.load %arg9[%c0_19, %c0_20] : memref<8x128xf32, #tpu.memory_space<vmem>>, vector<8x128xf32>
    tpu.vector_store %arg9[%c0_19, %c0_20], %23 {strides = array<i32>} : memref<8x128xf32, #tpu.memory_space<vmem>>, vector<8x128xf32>,
    return
  }
  func.func @transform_0(%arg0: i32) -> (i32, i32) {
    %c0_i32 = arith.constant 0 : i32
    %c0_i32_0 = arith.constant 0 : i32
    return %arg0, %c0_i32 : i32, i32
  }
  func.func @transform_1(%arg0: i32) -> (i32, i32) {
    %c0_i32 = arith.constant 0 : i32
    %c0_i32_0 = arith.constant 0 : i32
    %c0_i32_1 = arith.constant 0 : i32
    return %c0_i32, %c0_i32_0 : i32, i32
  }
  func.func @transform_2(%arg0: i32) -> (i32, i32) {
    %c0_i32 = arith.constant 0 : i32
    %c0_i32_0 = arith.constant 0 : i32
    %c0_i32_1 = arith.constant 0 : i32
    return %c0_i32, %c0_i32_0 : i32, i32
  }
  func.func @transform_3(%arg0: i32) -> (i32, i32) {
    %c0_i32 = arith.constant 0 : i32
    %c0_i32_0 = arith.constant 0 : i32
    %c0_i32_1 = arith.constant 0 : i32
    return %c0_i32, %c0_i32_0 : i32, i32
  }
  func.func @transform_4(%arg0: i32) -> (i32, i32) {
    %c0_i32 = arith.constant 0 : i32
    %c0_i32_0 = arith.constant 0 : i32
    %c0_i32_1 = arith.constant 0 : i32
    return %c0_i32, %c0_i32_0 : i32, i32
  }
  func.func @transform_5(%arg0: i32) -> (i32, i32) {
    %c0_i32 = arith.constant 0 : i32
    %c0_i32_0 = arith.constant 0 : i32
    %c0_i32_1 = arith.constant 0 : i32
    return %c0_i32, %c0_i32_0 : i32, i32
  }
  func.func @transform_6(%arg0: i32) -> (i32, i32) {
    %c0_i32 = arith.constant 0 : i32
    %c0_i32_0 = arith.constant 0 : i32
    %c0_i32_1 = arith.constant 0 : i32
    return %c0_i32, %c0_i32_0 : i32, i32
  }
  func.func @transform_7(%arg0: i32) -> (i32, i32) {
    %c0_i32 = arith.constant 0 : i32
    %c0_i32_0 = arith.constant 0 : i32
    return %arg0, %c0_i32 : i32, i32
  }
  func.func @transform_8(%arg0: i32) -> (i32, i32) {
    %c0_i32 = arith.constant 0 : i32
    %c0_i32_0 = arith.constant 0 : i32
    return %arg0, %c0_i32 : i32, i32
  }
}

</mosaic_0001>

<bundles_post_ra>
// kernel: _lambda_.1
= control target key start
LH: loop header
LB: loop body
LE: loop exit
PB: predicated region body
PF: predicated region fallthrough
CT: control target
= control target key end

     0   :  { %14 = vsyncpa [#allocation3], 0  ;;  %s965_s0 = inlined_call_operand.hbm [shape: f32[8,121], index: 0, kind: input, shape index: {}]   ;;  %s966_s1 = inlined_call_operand.hbm [shape: bf16[121,256], index: 1, kind: input, shape index: {}]   ;;  %s967_s2 = inlined_call_operand.hbm [shape: f32[1,256], index: 2, kind: input, shape index: {}]   ;;  %s968_s3 = inlined_call_operand.hbm [shape: bf16[256,128], index: 3, kind: input, shape index: {}]   ;;  %s969_s4 = inlined_call_operand.vmem [shape: f32[1,128], index: 4, kind: input, shape index: {}]   ;;  %s970_s5 = inlined_call_operand.hbm [shape: bf16[128,128], index: 5, kind: input, shape index: {}]   ;;  %s971_s6 = inlined_call_operand.vmem [shape: f32[1,128], index: 6, kind: input, shape index: {}]   ;;  %s972_s7 = inlined_call_operand.hbm [shape: f32[8,128], index: 7, kind: output, shape index: {0}]   ;;  %s973_s8 = inlined_call_operand.vmem [shape: f32[8,128], index: 8, kind: output, shape index: {1}]  }
   0x1   :  { %15 = vsyncpa [#allocation6], 0 }
   0x2   :  { %16 = vsyncpa [#allocation9], 0  ;;  %s33_s29 = sshll.u32 %s966_s1, 4  ;;  %s34_s29 = int_to_ptr.hbm [resolvable:$true] %s33_s29 }
   0x3   :  { %17 = vsyncpa [#allocation4], 0  ;;  %s882_s30 = smov [#allocation5]   ;;  %s57_s12 = sshll.u32 %s968_s3, 4  ;;  %s58_s12 = int_to_ptr.hbm [resolvable:$true] %s57_s12 }
   0x4   :  { %s35_s9 = sshll.u32 %s882_s30, 4  ;;  %s883_s13 = smov 128   ;;  %s36_s9 = int_to_ptr.vmem [resolvable:$true] %s35_s9 }
   0x5   :  { %s884_s14 = smov 8   ;;  %s885_s15 = smov [#allocation8]  }
   0x6   :  { %41 = dma.hbm_to_vmem [thread:$0]  %s34_s29, 2048, %s36_s9, [#allocation6], %s883_s13, %s883_s13, %s884_s14  }
   0x7   :  { %s59_s16 = sshll.u32 %s885_s15, 4  ;;  %s886_s17 = smov 64   ;;  %s60_s16 = int_to_ptr.vmem [resolvable:$true] %s59_s16 }
   0x8   :  { %s887_s18 = smov 4   ;;  %s23_s20 = sshll.u32 %s965_s0, 4  ;;  %s24_s20 = int_to_ptr.hbm [resolvable:$true] %s23_s20 }
   0x9   :  { %65 = dma.hbm_to_vmem [thread:$0]  %s58_s12, 2048, %s60_s16, [#allocation9], %s886_s17, %s886_s17, %s887_s18  }
   0xa   :  { %s888_s21 = smov [#allocation2]   ;;  %s47_s24 = sshll.u32 %s967_s2, 4  ;;  %s48_s24 = int_to_ptr.hbm [resolvable:$true] %s47_s24 }
   0xb   :  { %s25_s22 = sshll.u32 %s888_s21, 4  ;;  %s889_s25 = smov [#allocation7]   ;;  %s26_s22 = int_to_ptr.vmem [resolvable:$true] %s25_s22 }
   0xc   :  { %28 = dma.hbm_to_vmem [thread:$0]  %s24_s20, 128, %s26_s22, [#allocation3]  }
   0xd   :  { %s49_s26 = sshll.u32 %s889_s25, 4  ;;  %s72_s29 = sshll.u32 %s970_s5, 4  ;;  %s50_s26 = int_to_ptr.vmem [resolvable:$true] %s49_s26  ;;  %s73_s29 = int_to_ptr.hbm [resolvable:$true] %s72_s29 }
   0xe   :  { %52 = dma.hbm_to_vmem [thread:$0]  %s48_s24, 32, %s50_s26, [#allocation6]  }
   0xf   :  { %s890_s0 = smov [#allocation10]  }
  0x10   :  { %s74_s30 = sshll.u32 %s890_s0, 4  ;;  %s75_s30 = int_to_ptr.vmem [resolvable:$true] %s74_s30 }
  0x11   :  { %80 = dma.hbm_to_vmem [thread:$0]  %s73_s29, 1024, %s75_s30, [#allocation9], %s886_s17, %s886_s17, %s887_s18  }
  0x12   :  { %874 = dma.done.wait [#allocation3], 128  }
  0x13   :  { %875 = vsyncadd [#allocation3], 4294967168 }
  0x14   :  { %876 = dma.done.wait [#allocation6], 2080  }
  0x15   :  { %877 = vsyncadd [#allocation6], 4294965216 }
  0x16   :  { %878 = dma.done.wait [#allocation9], 3072  }
  0x17   :  { %879 = vsyncadd [#allocation9], 4294964224  ;;  %vm209_vm0 = vcmask 1043456   ;;  %vm210_vm1 = vcmask 1044480   ;;  %v891_v0 = vmov 65535   ;;  %v700_v27 = vld [vmem:[#allocation8 + $0x38] sm:$0xff] }
  0x18   :  { %v211_v1 = vsel %vm209_vm0, 4294967295, %v891_v0  ;;  %v573_v3 = vld [vmem:[#allocation5 + $0x70] sm:$0xf]  ;;  %v692_v4 = vld [vmem:[#allocation5 + $0x74] sm:$0x10]  ;;  %v708_v28 = vld [vmem:[#allocation8 + $0x78] sm:$0xff]  ;;  %381 = vmatpush.bf16.msra.mxu2 %v700_v27 }
  0x19   :  { %v212_v2 = vsel %vm210_vm1, %v211_v1, 0  ;;  %v691_v5 = vld [vmem:[#allocation5 + $0x74] sm:$0xf]  ;;  %v574_v6 = vor.u32 %v692_v4, %v573_v3  ;;  %v575_v7 = vld [vmem:[#allocation5 + $0x78] sm:$0x10]  ;;  %394 = vmatpush.bf16.msra.mxu3 %v708_v28  ;;  %v698_v38 = vld [vmem:[#allocation8 + $0x28] sm:$0xff] }
  0x1a   :  { %v578_v8 = vor.u32 %v691_v5, %v575_v7  ;;  %v565_v9 = vld [vmem:[#allocation5 + $0x60] sm:$0xf]  ;;  %v690_v10 = vld [vmem:[#allocation5 + $0x64] sm:$0xf0]  ;;  %v689_v12 = vld [vmem:[#allocation5 + $0x64] sm:$0xf] }
  0x1b   :  { %v214_v11 = vand.u32 %v574_v6, %v212_v2  ;;  %v567_v13 = vld [vmem:[#allocation5 + $0x68] sm:$0xf0]  ;;  %v566_v15 = vor.u32 %v690_v10, %v565_v9  ;;  %v557_v17 = vld [vmem:[#allocation5 + $0x50] sm:$0xf]  ;;  %v688_v18 = vld [vmem:[#allocation5 + $0x54] sm:$0xf0] }
  0x1c   :  { %v217_v14 = vand.u32 %v578_v8, %v212_v2  ;;  %v570_v16 = vor.u32 %v689_v12, %v567_v13  ;;  %v687_v19 = vld [vmem:[#allocation5 + $0x54] sm:$0xf]  ;;  %v559_v20 = vld [vmem:[#allocation5 + $0x58] sm:$0xf0]  ;;  %v558_v21 = vor.u32 %v688_v18, %v557_v17  ;;  %v549_v23 = vld [vmem:[#allocation5 + $0x40] sm:$0xf] }
  0x1d   :  { %219 = vmatpush.bf16.msra.mxu0 %v214_v11  ;;  %v562_v22 = vor.u32 %v687_v19, %v559_v20  ;;  %v686_v24 = vld [vmem:[#allocation5 + $0x44] sm:$0xf0]  ;;  %v685_v25 = vld [vmem:[#allocation5 + $0x44] sm:$0xf]  ;;  %v551_v26 = vld [vmem:[#allocation5 + $0x48] sm:$0xf0] }
  0x1e   :  { %232 = vmatpush.bf16.msra.mxu1 %v217_v14  ;;  %v550_v29 = vor.u32 %v686_v24, %v549_v23  ;;  %v541_v30 = vld [vmem:[#allocation5 + $0x30] sm:$0xf]  ;;  %v554_v32 = vor.u32 %v685_v25, %v551_v26  ;;  %v684_v33 = vld [vmem:[#allocation5 + $0x34] sm:$0xf0]  ;;  %v683_v34 = vld [vmem:[#allocation5 + $0x34] sm:$0xf] }
  0x1f   :  { %v699_v31 = vld [vmem:[#allocation8 + $0x30] sm:$0xff]  ;;  %v543_v36 = vld [vmem:[#allocation5 + $0x38] sm:$0xf0]  ;;  %v542_v37 = vor.u32 %v684_v33, %v541_v30  ;;  %v533_v40 = vld [vmem:[#allocation5 + $0x20] sm:$0xf]  ;;  %vm205_vm2 = vcmask 990208  }
  0x20   :  { %v707_v35 = vld [vmem:[#allocation8 + $0x70] sm:$0xff]  ;;  %382 = vmatpush.bf16.msra.mxu2 %v699_v31  ;;  %v546_v39 = vor.u32 %v683_v34, %v543_v36  ;;  %v682_v41 = vld [vmem:[#allocation5 + $0x24] sm:$0xf0]  ;;  %v681_v43 = vld [vmem:[#allocation5 + $0x24] sm:$0xf]  ;;  %s892_s9 = smov [#allocation11]  }
  0x21   :  { %220 = vmatpush.bf16.msra.mxu0 %v566_v15  ;;  %395 = vmatpush.bf16.msra.mxu3 %v707_v35  ;;  %v706_v42 = vld [vmem:[#allocation8 + $0x68] sm:$0xff]  ;;  %v534_v45 = vor.u32 %v682_v41, %v533_v40  ;;  %v697_v46 = vld [vmem:[#allocation8 + $0x20] sm:$0xff]  ;;  %v680_v49 = vld [vmem:[#allocation5 + $0x14] sm:$0xf0]  ;;  %s497_s10 = sshll.u32 %s892_s9, 4  ;;  %s499_s13 = sshll.u32 %s972_s7, 4  ;;  %s498_s10 = int_to_ptr.vmem [resolvable:$true] %s497_s10  ;;  %s500_s13 = int_to_ptr.hbm [resolvable:$true] %s499_s13 }
  0x22   :  { %233 = vmatpush.bf16.msra.mxu1 %v570_v16  ;;  %v535_v44 = vld [vmem:[#allocation5 + $0x28] sm:$0xf0]  ;;  %v525_v48 = vld [vmem:[#allocation5 + $0x10] sm:$0xf]  ;;  %v705_v50 = vld [vmem:[#allocation8 + $0x60] sm:$0xff] }
  0x23   :  { %v538_v47 = vor.u32 %v681_v43, %v535_v44  ;;  %v679_v51 = vld [vmem:[#allocation5 + $0x14] sm:$0xf]  ;;  %v527_v52 = vld [vmem:[#allocation5 + $0x18] sm:$0xf0]  ;;  %v526_v53 = vor.u32 %v680_v49, %v525_v48  ;;  %v517_v56 = vld [vmem:[#allocation5] sm:$0xf] }
  0x24   :  { %383 = vmatpush.bf16.msra.mxu2 %v698_v38  ;;  %v696_v54 = vld [vmem:[#allocation8 + $0x18] sm:$0xff]  ;;  %v530_v55 = vor.u32 %v679_v51, %v527_v52  ;;  %v678_v57 = vld [vmem:[#allocation5 + $0x4] sm:$0xf0]  ;;  %v677_v59 = vld [vmem:[#allocation5 + $0x4] sm:$0xf] }
  0x25   :  { %221 = vmatpush.bf16.msra.mxu0 %v558_v21  ;;  %396 = vmatpush.bf16.msra.mxu3 %v706_v42  ;;  %v704_v58 = vld [vmem:[#allocation8 + $0x58] sm:$0xff]  ;;  %v519_v60 = vld [vmem:[#allocation5 + $0x8] sm:$0xf0]  ;;  %v518_v61 = vor.u32 %v678_v57, %v517_v56  ;;  %v695_v63 = vld [vmem:[#allocation8 + $0x10] sm:$0xff] }
  0x26   :  { %234 = vmatpush.bf16.msra.mxu1 %v562_v22  ;;  %v103_v62 = vld [vmem:[#allocation2] sm:$0xff]  ;;  %v522_v0 = vor.u32 %v677_v59, %v519_v60  ;;  %v694_v3 = vld [vmem:[#allocation8 + $0x8] sm:$0xff]  ;;  %v693_v5 = vld [vmem:[#allocation8] sm:$0xff] }
  0x27   :  { %v703_v1 = vld [vmem:[#allocation8 + $0x50] sm:$0xff]  ;;  %v104_v2 = vpack.c.bf16 %v103_v62, %v103_v62  ;;  %v702_v4 = vld [vmem:[#allocation8 + $0x48] sm:$0xff]  ;;  %v701_v6 = vld [vmem:[#allocation8 + $0x40] sm:$0xff] }
  0x28   :  { %384 = vmatpush.bf16.msra.mxu2 %v697_v46  ;;  %v716_v7 = vld [vmem:[#allocation10 + $0x38] sm:$0xff]  ;;  %v715_v8 = vld [vmem:[#allocation10 + $0x30] sm:$0xff]  ;;  %v714_v9 = vld [vmem:[#allocation10 + $0x28] sm:$0xff] }
  0x29   :  { %222 = vmatpush.bf16.msra.mxu0 %v550_v29  ;;  %397 = vmatpush.bf16.msra.mxu3 %v705_v50  ;;  %v713_v10 = vld [vmem:[#allocation10 + $0x20] sm:$0xff]  ;;  %v712_v11 = vld [vmem:[#allocation10 + $0x18] sm:$0xff]  ;;  %v711_v13 = vld [vmem:[#allocation10 + $0x10] sm:$0xff] }
  0x2a   :  { %235 = vmatpush.bf16.msra.mxu1 %v554_v32  ;;  %v121_v12 = vld [vmem:[#allocation7] sm:$0x3]  ;;  %v710_v26 = vld [vmem:[#allocation10 + $0x8] sm:$0xff]  ;;  %v709_v27 = vld [vmem:[#allocation10] sm:$0xff] }
  0x2b   :  { %v123_v14 = vperm.slane %v121_v12, 0  ;;  %v124_v15 = vperm.slane %v121_v12, 1  ;;  %v728_v28 = vld [vmem:[%s969_s4] ss:$0 sm:$0xff] }
  0x2c   :  { %385 = vmatpush.bf16.msra.mxu2 %v696_v54 }
  0x2d   :  { %223 = vmatpush.bf16.msra.mxu0 %v542_v37  ;;  %398 = vmatpush.bf16.msra.mxu3 %v704_v58  ;;  %v729_v37 = vld [vmem:[%s971_s6] ss:$0 sm:$0xff] }
  0x2e   :  { %236 = vmatpush.bf16.msra.mxu1 %v546_v39 }
  0x30   :  { %386 = vmatpush.bf16.msra.mxu2 %v695_v63 }
  0x31   :  { %224 = vmatpush.bf16.msra.mxu0 %v534_v45  ;;  %399 = vmatpush.bf16.msra.mxu3 %v703_v1 }
  0x32   :  { %237 = vmatpush.bf16.msra.mxu1 %v538_v47 }
  0x34   :  { %387 = vmatpush.bf16.msra.mxu2 %v694_v3 }
  0x35   :  { %225 = vmatpush.bf16.msra.mxu0 %v526_v53  ;;  %400 = vmatpush.bf16.msra.mxu3 %v702_v4 }
  0x36   :  { %238 = vmatpush.bf16.msra.mxu1 %v530_v55 }
  0x38   :  { %388 = vmatpush.bf16.msra.mxu2 %v693_v5 }
  0x39   :  { %226 = vmatpush.bf16.msra.mxu0 %v518_v61  ;;  %401 = vmatpush.bf16.msra.mxu3 %v701_v6 }
  0x3a   :  { %239 = vmatpush.bf16.msra.mxu1 %v522_v0 }
  0x3c   :  { %579 = vmatmul.msk.bf16.vlgmr.msra.gmra.mxu0 %vm205_vm2, %v104_v2 }
  0x3d   :  { %580 = vmatmul.msk.bf16.vlgmr.msra.gmra.mxu1 %vm205_vm2, %v104_v2  ;;  %478 = vmatpush.bf16.msrb.mxu0 %v716_v7 }
  0x41   :  { %479 = vmatpush.bf16.msrb.mxu0 %v715_v8 }
  0x45   :  { %480 = vmatpush.bf16.msrb.mxu0 %v714_v9 }
  0x49   :  { %481 = vmatpush.bf16.msrb.mxu0 %v713_v10 }
  0x4d   :  { %482 = vmatpush.bf16.msrb.mxu0 %v712_v11 }
  0x51   :  { %483 = vmatpush.bf16.msrb.mxu0 %v711_v13 }
  0x55   :  { %484 = vmatpush.bf16.msrb.mxu0 %v710_v26 }
  0x59   :  { %485 = vmatpush.bf16.msrb.mxu0 %v709_v27 }
  0xb9   :  { %v228_v16 = vpop.f32.mrf.mxu0 }
  0xba   :  { %v229_v17 = vadd.f32 %v228_v16, %v123_v14  ;;  %v241_v18 = vpop.f32.mrf.mxu1 }
  0xbb   :  { %v242_v19 = vadd.f32 %v241_v18, %v124_v15 }
  0xbc   :  { %v245_v20 = vmax.f32 %v229_v17, 0.0 }
  0xbd   :  { %v246_v21 = vmax.f32 %v242_v19, 0.0 }
  0xbe   :  { %v247_v22 = vpack.c.bf16 %v245_v20, %v245_v20 }
  0xbf   :  { %v248_v23 = vpack.c.bf16 %v246_v21, %v246_v21 }
  0xc0   :  { %389 = vmatmul.bf16.vlgmr.msra.gmra.mxu2 %v247_v22 }
  0xc1   :  { %402 = vmatmul.bf16.vlgmr.msra.gmra.mxu3 %v248_v23  ;;  %v230_v24 = vpop.f32.mrf.mxu0 }
  0xc2   :  { %v243_v25 = vpop.f32.mrf.mxu1 }
 0x143   :  { %v390_v29 = vpop.f32.mrf.mxu2 }
 0x144   :  { %v391_v30 = vadd.f32 %v728_v28, %v390_v29  ;;  %v403_v31 = vpop.f32.mrf.mxu3 }
 0x146   :  { %v404_v32 = vadd.f32 %v403_v31, %v391_v30 }
 0x148   :  { %v407_v33 = vmax.f32 %v404_v32, 0.0 }
 0x14a   :  { %408 = vst [vmem:[#allocation11] sm:$0xff] %v407_v33  ;;  %v409_v34 = vpack.c.bf16 %v407_v33, %v407_v33 }
 0x14b   :  { %v392_v35 = vpop.f32.mrf.mxu2  ;;  %502 = dma.vmem_to_hbm [thread:$0]  %s498_s10, 128, %s500_s13, [#allocation4]  }
 0x14c   :  { %v405_v36 = vpop.f32.mrf.mxu3  ;;  %486 = vmatmul.bf16.vlgmr.msrb.gmra.mxu0 %v409_v34 }
 0x1c9   :  { %v487_v38 = vpop.f32.mrf.mxu0 }
 0x1ca   :  { %v488_v39 = vadd.f32 %v729_v37, %v487_v38 }
 0x1cc   :  { %491 = vst [vmem:[%s973_s8] sm:$0xff] %v488_v39 }
 0x1d1   :  { %v489_v40 = vpop.f32.mrf.mxu0 }
 0x1d2   :  { %880 = dma.done.wait [#allocation4], 128  }
 0x1d3   :  { %881 = vsyncadd [#allocation4], 4294967168 }
 0x1d4   :  { %511 = vsyncpa [#allocation3], 1 }
 0x1d5   :  { %512 = vsyncpa [#allocation6], 1 }
 0x1d6   :  { %513 = vsyncpa [#allocation9], 1 }
 0x1d7   :  { %514 = vsyncpa [#allocation4], 1 }

</bundles_post_ra>
